<compile_context>
chip_gen: v6e
topology: v6e:2x2x1
jax: 0.10.0
libtpu: 0.0.40
codegen_flags: <defaults>
</compile_context>

<pallas_src>
import functools

import jax
import jax.numpy as jnp
from jax import lax
from jax.experimental import pallas as pl
from jax.experimental.pallas import tpu as pltpu


def _heat_kernel(u_ref, o_ref, *, coeff, num_steps):
    """num_steps explicit-Euler heat steps on a (rows, W) tile.

    coeff = dt * alpha / dx**2.  Folded update:
        u <- u * (1 - 2c) + c * (u[i-1] + u[i+1]),  zero-padded boundaries.
    Neighbor shifts use pltpu.roll (XLU slot); the wrapped boundary lane is
    zeroed with hoisted f32 0/1 masks (plain VPU multiplies).
    """
    u = u_ref[...].astype(jnp.float32)               # (rows, W)
    rows, W = u.shape

    lane = lax.broadcasted_iota(jnp.int32, (rows, W), 1)
    left_mask = (lane > 0).astype(jnp.float32)        # lane 0 has no left neighbor
    right_mask = (lane < (W - 1)).astype(jnp.float32)  # lane W-1 has no right neighbor

    c = jnp.float32(coeff)
    one_minus_2c = jnp.float32(1.0 - 2.0 * coeff)

    def step(ucur):
        # roll axis must be a non-negative axis index; W-1 shift == shift of -1.
        u_left = pltpu.roll(ucur, shift=1, axis=1) * left_mask
        u_right = pltpu.roll(ucur, shift=W - 1, axis=1) * right_mask
        return ucur * one_minus_2c + c * (u_left + u_right)

    if num_steps == 1:
        u = step(u)
    else:
        # Temporal blocking: fuse k steps per HBM round-trip (rows are
        # independent and the full W axis is in every block, so no halo).
        # Unrolled so adjacent steps' XLU rolls / VPU muls interleave.
        # TODO(synk): for large num_steps, reformulate as one MXU matmul
        # against a precomputed tridiagonal (or matrix-power) operator.
        u = lax.fori_loop(0, num_steps, lambda _, x: step(x), u, unroll=True)

    o_ref[...] = u.astype(o_ref.dtype)


def _pick_row_tile(rows, W, dtype, target_block_bytes=6 << 20):
    """Row-tile sized so one (row_tile, W) block is ~target_block_bytes.

    Double-buffered input + output plus a few in-kernel tile temporaries
    stays well under the 48 MiB scoped-VMEM limit set below (fits v7x's
    64 MiB/TC as well as v5e/v6e's 128 MiB).
    """
    itemsize = jnp.dtype(dtype).itemsize
    sublane = max(8, 32 // itemsize)        # 8 for f32, 16 for bf16, 32 for int8
    row_bytes = W * itemsize
    # TODO(synk): for extremely large W (minimum sublane-group block > budget),
    # fall back to W-tiling with a halo instead of a single huge block.
    tile = max(sublane, (target_block_bytes // max(row_bytes, 1)) // sublane * sublane)

    rows_r = ((rows + sublane - 1) // sublane) * sublane
    tile = min(tile, rows_r)

    # v7x has 2 TensorCores; give the "parallel" grid axis at least 2 steps
    # whenever the problem is big enough to split.
    if tile >= rows and rows > sublane:
        half = ((pl.cdiv(rows, 2) + sublane - 1) // sublane) * sublane
        tile = max(sublane, half)
    return tile


def heat_equation_1d_step(u, dx, dt, alpha, *, num_steps=1, row_tile=None,
                          donate_input=False):
    """u: (B, C, W) float32. Applies `num_steps` explicit Euler heat steps.

    num_steps=1 (default) matches HeatEquation1D.forward exactly.
    Set donate_input=True (and donate u at the jit boundary) when time-marching
    in place to alias the output HBM buffer onto the input.
    """
    B, C, W = u.shape
    rows = B * C
    u2 = u.reshape(rows, W)

    if row_tile is None:
        row_tile = _pick_row_tile(rows, W, u2.dtype)

    # Non-divisible row counts are handled by Pallas partial boundary blocks:
    # out-of-bounds rows read garbage (rows are independent) and their writes
    # are dropped, so no wrapper-side pad / slice (extra HBM traffic) is needed.
    grid_rows = pl.cdiv(rows, row_tile)

    coeff = float(dt) * float(alpha) / (float(dx) ** 2)
    kernel = functools.partial(_heat_kernel, coeff=coeff, num_steps=int(num_steps))

    out2 = pl.pallas_call(
        kernel,
        out_shape=jax.ShapeDtypeStruct((rows, W), u2.dtype),
        grid_spec=pltpu.PrefetchScalarGridSpec(
            num_scalar_prefetch=0,
            grid=(grid_rows,),
            # Full-W blocks: legal for any W (block dim equals the array dim);
            # lane-dense stores whenever W is a multiple of 128.
            in_specs=[pl.BlockSpec((row_tile, W), lambda i: (i, 0))],
            out_specs=pl.BlockSpec((row_tile, W), lambda i: (i, 0)),
        ),
        compiler_params=pltpu.CompilerParams(
            dimension_semantics=("parallel",),
            vmem_limit_bytes=48 * 1024 * 1024,
        ),
        input_output_aliases={0: 0} if donate_input else {},
    )(u2)

    return out2.reshape(B, C, W)


def _reference(u, dx, dt, alpha, num_steps=1):
    """Pure-JAX reference (zero-padded [1,-2,1] stencil along last axis)."""
    for _ in range(num_steps):
        up = jnp.pad(u, ((0, 0), (0, 0), (1, 1)))
        lap = up[:, :, :-2] - 2.0 * u + up[:, :, 2:]
        u = u + dt * alpha * (lap / dx ** 2)
    return u


if __name__ == "__main__":
    key = jax.random.PRNGKey(0)
    alpha = 0.1
    dx = 0.05
    dt = 1e-4

    # Small shape matching the module's NCW layout.
    B, C, W = 2, 4, 128
    u = jax.random.normal(key, (B, C, W), dtype=jnp.float32)

    out = heat_equation_1d_step(u, dx, dt, alpha)
    out = jax.block_until_ready(out)

    ref = _reference(u, dx, dt, alpha)
    assert out.shape == u.shape and out.dtype == u.dtype
    assert jnp.allclose(out, ref, atol=1e-5, rtol=1e-5)

    # Ragged rows (rows = 15, not a multiple of 8) exercises the partial
    # boundary block path; W = 256 exercises a wider lane extent.
    B2, C2, W2 = 3, 5, 256
    u2 = jax.random.normal(jax.random.PRNGKey(1), (B2, C2, W2), dtype=jnp.float32)
    out2 = jax.block_until_ready(heat_equation_1d_step(u2, dx, dt, alpha))
    assert jnp.allclose(out2, _reference(u2, dx, dt, alpha), atol=1e-5, rtol=1e-5)

    # Multi-step temporal blocking path (not part of the module's forward,
    # but useful when time-marching).
    out3 = jax.block_until_ready(heat_equation_1d_step(u, dx, dt, alpha, num_steps=4))
    assert jnp.allclose(out3, _reference(u, dx, dt, alpha, num_steps=4),
                        atol=1e-5, rtol=1e-5)

    print("KERNEL_OK")
</pallas_src>

<mosaic_0001>
module attributes {stable_mosaic.version = 11 : i64} {
  func.func @_heat_kernel(%arg0: i32, %arg1: memref<8x128xf32, #tpu.memory_space<vmem>>, %arg2: memref<8x128xf32, #tpu.memory_space<vmem>>) attributes {dimension_semantics = [#tpu.dimension_semantics<parallel>], iteration_bounds = array<i64: 1>, scalar_prefetch = 0 : i64, scratch_operands = 0 : i64, tpu.core_type = #tpu.core_type<tc>, window_params = [{transform_indices = @transform_0, window_bounds = array<i64: 8, 128>}, {transform_indices = @transform_1, window_bounds = array<i64: 8, 128>}]} {
    %c0 = arith.constant 0 : index
    %c0_0 = arith.constant 0 : index
    %0 = vector.load %arg1[%c0, %c0_0] : memref<8x128xf32, #tpu.memory_space<vmem>>, vector<8x128xf32>
    %1 = tpu.iota {dimensions = array<i32: 1>} : vector<8x128xi32>
    %c0_i32 = arith.constant 0 : i32
    %2 = vector.broadcast %c0_i32 : i32 to vector<8x128xi32>
    %3 = arith.cmpi sgt, %1, %2 : vector<8x128xi32>
    %4 = arith.extui %3 : vector<8x128xi1> to vector<8x128xi32>
    %5 = arith.sitofp %4 : vector<8x128xi32> to vector<8x128xf32>
    %c127_i32 = arith.constant 127 : i32
    %6 = vector.broadcast %c127_i32 : i32 to vector<8x128xi32>
    %7 = arith.cmpi slt, %1, %6 : vector<8x128xi32>
    %8 = arith.extui %7 : vector<8x128xi1> to vector<8x128xi32>
    %9 = arith.sitofp %8 : vector<8x128xi32> to vector<8x128xf32>
    %c1_i32 = arith.constant 1 : i32
    %10 = tpu.dynamic_rotate %0 by %c1_i32 dim 1 : vector<8x128xf32>, i32 -> vector<8x128xf32>
    %11 = arith.mulf %10, %5 : vector<8x128xf32>
    %c127_i32_1 = arith.constant 127 : i32
    %12 = tpu.dynamic_rotate %0 by %c127_i32_1 dim 1 : vector<8x128xf32>, i32 -> vector<8x128xf32>
    %13 = arith.mulf %12, %9 : vector<8x128xf32>
    %cst = arith.constant 0.991999983 : f32
    %14 = vector.broadcast %cst : f32 to vector<8x128xf32>
    %15 = arith.mulf %0, %14 : vector<8x128xf32>
    %16 = arith.addf %11, %13 : vector<8x128xf32>
    %cst_2 = arith.constant 4.000000e-03 : f32
    %17 = vector.broadcast %cst_2 : f32 to vector<8x128xf32>
    %18 = arith.mulf %17, %16 : vector<8x128xf32>
    %19 = arith.addf %15, %18 : vector<8x128xf32>
    %c0_3 = arith.constant 0 : index
    %c0_4 = arith.constant 0 : index
    %20 = vector.load %arg2[%c0_3, %c0_4] : memref<8x128xf32, #tpu.memory_space<vmem>>, vector<8x128xf32>
    tpu.vector_store %arg2[%c0_3, %c0_4], %19 {strides = array<i32>} : memref<8x128xf32, #tpu.memory_space<vmem>>, vector<8x128xf32>,
    return
  }
  func.func @transform_0(%arg0: i32) -> (i32, i32) {
    %c0_i32 = arith.constant 0 : i32
    %c0_i32_0 = arith.constant 0 : i32
    return %arg0, %c0_i32 : i32, i32
  }
  func.func @transform_1(%arg0: i32) -> (i32, i32) {
    %c0_i32 = arith.constant 0 : i32
    %c0_i32_0 = arith.constant 0 : i32
    return %arg0, %c0_i32 : i32, i32
  }
}

</mosaic_0001>

<bundles_post_ra>
// kernel: tpu_custom_call.1
= control target key start
LH: loop header
LB: loop body
LE: loop exit
PB: predicated region body
PF: predicated region fallthrough
CT: control target
= control target key end

     0   :  { %6 = vsyncpa [#allocation3], 0  ;;  %s128_s0 = inlined_call_operand.hbm [shape: f32[8,128], index: 0, kind: input, shape index: {}]   ;;  %s129_s1 = inlined_call_operand.hbm [shape: f32[8,128], index: 1, kind: output, shape index: {}]  }
   0x1   :  { %7 = vsyncpa [#allocation4], 0  ;;  %s107_s6 = smov [#allocation2]  }
   0x2   :  { %s14_s7 = sshll.u32 %s107_s6, 4  ;;  %s15_s7 = int_to_ptr.vmem [resolvable:$true] %s14_s7 }
   0x3   :  { %s71_s8 = scalar_lea.vmem %s15_s7, 128  ;;  %p76_p1 = scmp.lt.s32.totalorder %s15_s7, %s15_s7 }
   0x4   :  { %p72_p0 = scmp.ne.s32.totalorder %s15_s7, %s71_s8  ;;  %p77_p2 = scmp.lt.s32.totalorder %s71_s8, %s71_s8 }
   0x6   :  { %p78_p3 = por %p77_p2, %p76_p1 }
   0x8   :  { %p79_p4 = pnand %p78_p3, %p72_p0 }
   0xa   :  { %82 = shalt.err (!%p79_p4)
}
   0xb   :  { %17 = dma.hbm_to_vmem [thread:$0]  %s128_s0, 128, %s15_s7, [#allocation3]  }
   0xc   :  { %103 = dma.done.wait [#allocation3], 128  }
   0xd   :  { %104 = vsyncadd [#allocation3], 4294967168  ;;  %v21_v0 = vld [vmem:[#allocation2] sm:$0xff]  ;;  %s108_s11 = smov 1   ;;  %s109_s12 = smov 127   ;;  %v22_v1 = vlaneseq  ;;  %v110_v4 = vmov 0.0  }
   0xe   :  { %30 = vrot.lane.b32.xlu0 %v21_v0, %s108_s11  ;;  %v36_v10 = vmul.f32 0.992, %v21_v0  ;;  %s111_s0 = smov [#allocation5]  }
   0xf   :  { %v23_v2 = vand.u32 127, %v22_v1  ;;  %s47_s13 = sshll.u32 %s111_s0, 4  ;;  %s48_s13 = int_to_ptr.vmem [resolvable:$true] %s47_s13 }
  0x10   :  { %s83_s14 = scalar_lea.vmem %s48_s13, 128  ;;  %p88_p6 = scmp.lt.s32.totalorder %s48_s13, %s48_s13 }
  0x11   :  { %vm24_vm0 = vcmp.gt.s32.totalorder %v23_v2, 0  ;;  %vm27_vm1 = vcmp.lt.s32.totalorder %v23_v2, 127  ;;  %p84_p5 = scmp.ne.s32.totalorder %s48_s13, %s83_s14  ;;  %p89_p7 = scmp.lt.s32.totalorder %s83_s14, %s83_s14 }
  0x12   :  { %33 = vrot.lane.b32.xlu0 %v21_v0, %s109_s12  ;;  %v56_v5 = vsel %vm24_vm0, 1.0, %v110_v4  ;;  %v57_v6 = vsel %vm27_vm1, 1.0, %v110_v4 }
  0x13   :  { %p90_p8 = por %p89_p7, %p88_p6 }
  0x15   :  { %p91_p9 = pnand %p90_p8, %p84_p5 }
  0x80   :  { %v31_v3 = vpop.permute.xlu0 %30 }
  0x81   :  { %v32_v8 = vmul.f32 %v56_v5, %v31_v3 }
  0x84   :  { %v34_v7 = vpop.permute.xlu0 %33 }
  0x85   :  { %v35_v9 = vmul.f32 %v57_v6, %v34_v7 }
  0x87   :  { %v37_v11 = vadd.f32 %v35_v9, %v32_v8 }
  0x89   :  { %v38_v12 = vmul.f32 0.004, %v37_v11 }
  0x8b   :  { %v39_v13 = vadd.f32 %v38_v12, %v36_v10 }
  0x8d   :  { %40 = vst [vmem:[#allocation5] sm:$0xff] %v39_v13 }
  0x8e   :  { %94 = shalt.err (!%p91_p9)
}
  0x8f   :  { %50 = dma.vmem_to_hbm [thread:$0]  %s48_s13, 128, %s129_s1, [#allocation4]  }
  0x90   :  { %105 = dma.done.wait [#allocation4], 128  }
  0x91   :  { %106 = vsyncadd [#allocation4], 4294967168 }
  0x92   :  { %54 = vsyncpa [#allocation3], 1 }
  0x93   :  { %55 = vsyncpa [#allocation4], 1 }

</bundles_post_ra>
